<compile_context>
chip_gen: v7x
topology: tpu7x:2x2x1
jax: 0.10.0
libtpu: 0.0.40
codegen_flags: <defaults>
</compile_context>

<pallas_src>
import jax
import jax.numpy as jnp
from jax.experimental import pallas as pl
from jax.experimental.pallas import tpu as pltpu

EMBED_SIZE = 256
FF_HIDDEN_DIM = 512


def _round_up(n, m):
    return ((n + m - 1) // m) * m


def ffn_kernel(x_ref, w1_ref, b1_ref, w2_ref, b2_ref, o_ref):
    # Cast x to bf16 on the VPU right before the MXU op (cheaper than a
    # separate, un-fused wrapper-side astype pass over HBM).
    x_bf = x_ref[...].astype(jnp.bfloat16)
    # fc1 on the MXU (bf16 operands, f32 accumulation).
    h = jnp.dot(x_bf, w1_ref[...], preferred_element_type=jnp.float32)
    # bias + ReLU in f32 (accumulator dtype; safe on v5e's VPU).
    h = jnp.maximum(h + b1_ref[...], 0.0)
    # fc2 on the MXU: cast the activation back to bf16 just for the matmul.
    o = jnp.dot(h.astype(w2_ref.dtype), w2_ref[...],
                preferred_element_type=jnp.float32)
    o_ref[...] = (o + b2_ref[...]).astype(o_ref.dtype)


def simple_feed_forward(x, w1, b1, w2, b2, *, tm=1024):
    """x: (N, embed) in its native dtype. w1: (embed, hidden), b1: (1, hidden),
       w2: (hidden, embed), b2: (1, embed). Weights should already be bf16
       (cast once by the caller); they are cast here only if needed.
       Returns (N, embed) in x.dtype."""
    N, E = x.shape
    H = w1.shape[1]
    out_dtype = x.dtype

    # Weights in bf16 for the MXU (no-op if the caller already passed bf16),
    # biases in f32 for the f32 epilogue.
    w1_in = w1 if w1.dtype == jnp.bfloat16 else w1.astype(jnp.bfloat16)
    w2_in = w2 if w2.dtype == jnp.bfloat16 else w2.astype(jnp.bfloat16)
    b1_in = b1.astype(jnp.float32)
    b2_in = b2.astype(jnp.float32)

    # Row tile: big (amortizes per-step overhead, fills MXU-M, long DMA bursts)
    # but never larger than the 8-rounded problem size. When N is large enough,
    # cap it so the 1-D parallel grid has >=2 steps (both v7x TensorCores work).
    tm_eff = max(8, min(tm, _round_up(N, 8)))
    if N > 512:
        tm_eff = min(tm_eff, _round_up(pl.cdiv(N, 2), 256))

    grid = (pl.cdiv(N, tm_eff),)

    cost = pl.CostEstimate(
        flops=4 * N * E * H,          # two N x E x H / N x H x E matmuls
        transcendentals=0,
        bytes_accessed=(N * E * x.dtype.itemsize            # x read
                        + E * H * 2 + H * E * 2             # bf16 weights
                        + H * 4 + E * 4                     # f32 biases
                        + N * E * jnp.dtype(out_dtype).itemsize),  # out write
    )

    out = pl.pallas_call(
        ffn_kernel,
        out_shape=jax.ShapeDtypeStruct((N, E), out_dtype),
        grid_spec=pl.GridSpec(
            grid=grid,
            in_specs=[
                pl.BlockSpec((tm_eff, E), lambda i: (i, 0)),   # x row tile
                pl.BlockSpec((E, H), lambda i: (0, 0)),        # w1 (resident)
                pl.BlockSpec((1, H), lambda i: (0, 0)),        # b1
                pl.BlockSpec((H, E), lambda i: (0, 0)),        # w2 (resident)
                pl.BlockSpec((1, E), lambda i: (0, 0)),        # b2
            ],
            out_specs=pl.BlockSpec((tm_eff, E), lambda i: (i, 0)),
        ),
        compiler_params=pltpu.CompilerParams(
            dimension_semantics=("parallel",)),
        cost_estimate=cost,
    )(x, w1_in, b1_in, w2_in, b2_in)

    return out


def init_params(key, embed_size, ff_hidden_dim, dtype=jnp.float32):
    """Deterministic init mirroring nn.Linear's default U(-1/sqrt(fan_in), 1/sqrt(fan_in))."""
    k1, k2, k3, k4 = jax.random.split(key, 4)
    bound1 = 1.0 / jnp.sqrt(embed_size)
    bound2 = 1.0 / jnp.sqrt(ff_hidden_dim)
    # stored as [in, out] for the kernel (x @ W)
    w1 = jax.random.uniform(k1, (embed_size, ff_hidden_dim), dtype,
                            minval=-bound1, maxval=bound1)
    b1 = jax.random.uniform(k2, (1, ff_hidden_dim), dtype,
                            minval=-bound1, maxval=bound1)
    w2 = jax.random.uniform(k3, (ff_hidden_dim, embed_size), dtype,
                            minval=-bound2, maxval=bound2)
    b2 = jax.random.uniform(k4, (1, embed_size), dtype,
                            minval=-bound2, maxval=bound2)
    return w1, b1, w2, b2


if __name__ == "__main__":
    key = jax.random.PRNGKey(0)
    k_x, k_p = jax.random.split(key)

    batch, seq = 2, 8
    x = jax.random.normal(k_x, (batch, seq, EMBED_SIZE), dtype=jnp.float32)
    w1, b1, w2, b2 = init_params(k_p, EMBED_SIZE, FF_HIDDEN_DIM)

    # Cast the weight master copies to bf16 once (outside the per-call wrapper).
    w1_bf = w1.astype(jnp.bfloat16)
    w2_bf = w2.astype(jnp.bfloat16)

    # Flatten (batch, seq, embed) -> (N, embed) for the kernel, restore after.
    x2d = x.reshape(batch * seq, EMBED_SIZE)
    out2d = simple_feed_forward(x2d, w1_bf, b1, w2_bf, b2)
    out = out2d.reshape(batch, seq, EMBED_SIZE)
    jax.block_until_ready(out)

    # Pure-JAX f32 reference; loose tolerances because the kernel uses bf16
    # operands on the MXU (f32 accumulation).
    ref = jnp.maximum(x2d @ w1 + b1, 0.0) @ w2 + b2
    assert out2d.shape == ref.shape
    assert jnp.allclose(out2d, ref, atol=3e-2, rtol=3e-2), (
        float(jnp.max(jnp.abs(out2d - ref))))

    print("KERNEL_OK")
</pallas_src>

<mosaic_0001>
module attributes {stable_mosaic.version = 11 : i64} {
  func.func @ffn_kernel(%arg0: i32, %arg1: memref<16x256xf32, #tpu.memory_space<vmem>>, %arg2: memref<256x512xbf16, #tpu.memory_space<vmem>>, %arg3: memref<1x512xf32, #tpu.memory_space<vmem>>, %arg4: memref<512x256xbf16, #tpu.memory_space<vmem>>, %arg5: memref<1x256xf32, #tpu.memory_space<vmem>>, %arg6: memref<16x256xf32, #tpu.memory_space<vmem>>) attributes {dimension_semantics = [#tpu.dimension_semantics<parallel>], iteration_bounds = array<i64: 1>, scalar_prefetch = 0 : i64, scratch_operands = 0 : i64, tpu.core_type = #tpu.core_type<tc>, window_params = [{transform_indices = @transform_0, window_bounds = array<i64: 16, 256>}, {pipeline_mode = #tpu.pipeline_mode<synchronous>, transform_indices = @transform_1, window_bounds = array<i64: 256, 512>}, {pipeline_mode = #tpu.pipeline_mode<synchronous>, transform_indices = @transform_2, window_bounds = array<i64: 1, 512>}, {pipeline_mode = #tpu.pipeline_mode<synchronous>, transform_indices = @transform_3, window_bounds = array<i64: 512, 256>}, {pipeline_mode = #tpu.pipeline_mode<synchronous>, transform_indices = @transform_4, window_bounds = array<i64: 1, 256>}, {transform_indices = @transform_5, window_bounds = array<i64: 16, 256>}]} {
    %c0 = arith.constant 0 : index
    %c0_0 = arith.constant 0 : index
    %0 = vector.load %arg1[%c0, %c0_0] : memref<16x256xf32, #tpu.memory_space<vmem>>, vector<16x256xf32>
    %1 = arith.truncf %0 : vector<16x256xf32> to vector<16x256xbf16>
    %c0_1 = arith.constant 0 : index
    %c0_2 = arith.constant 0 : index
    %2 = vector.load %arg2[%c0_1, %c0_2] : memref<256x512xbf16, #tpu.memory_space<vmem>>, vector<256x512xbf16>
    %cst = arith.constant dense<0.000000e+00> : vector<16x512xf32>
    %3 = tpu.matmul %1, %2, %cst {dimension_numbers = #tpu.dot_dimension_numbers<[1], [0], [0], [1], [0, 0, 1, 1], [], []>} : vector<16x256xbf16>, vector<256x512xbf16>, vector<16x512xf32> -> vector<16x512xf32>
    %c0_3 = arith.constant 0 : index
    %c0_4 = arith.constant 0 : index
    %4 = vector.load %arg3[%c0_3, %c0_4] : memref<1x512xf32, #tpu.memory_space<vmem>>, vector<1x512xf32>
    %5 = vector.broadcast %4 : vector<1x512xf32> to vector<16x512xf32>
    %6 = arith.addf %3, %5 : vector<16x512xf32>
    %cst_5 = arith.constant 0.000000e+00 : f32
    %7 = vector.broadcast %cst_5 : f32 to vector<16x512xf32>
    %8 = arith.maximumf %6, %7 : vector<16x512xf32>
    %9 = arith.truncf %8 : vector<16x512xf32> to vector<16x512xbf16>
    %c0_6 = arith.constant 0 : index
    %c0_7 = arith.constant 0 : index
    %10 = vector.load %arg4[%c0_6, %c0_7] : memref<512x256xbf16, #tpu.memory_space<vmem>>, vector<512x256xbf16>
    %cst_8 = arith.constant dense<0.000000e+00> : vector<16x256xf32>
    %11 = tpu.matmul %9, %10, %cst_8 {dimension_numbers = #tpu.dot_dimension_numbers<[1], [0], [0], [1], [0, 0, 1, 1], [], []>} : vector<16x512xbf16>, vector<512x256xbf16>, vector<16x256xf32> -> vector<16x256xf32>
    %c0_9 = arith.constant 0 : index
    %c0_10 = arith.constant 0 : index
    %12 = vector.load %arg5[%c0_9, %c0_10] : memref<1x256xf32, #tpu.memory_space<vmem>>, vector<1x256xf32>
    %13 = vector.broadcast %12 : vector<1x256xf32> to vector<16x256xf32>
    %14 = arith.addf %11, %13 : vector<16x256xf32>
    %c0_11 = arith.constant 0 : index
    %c0_12 = arith.constant 0 : index
    %15 = vector.load %arg6[%c0_11, %c0_12] : memref<16x256xf32, #tpu.memory_space<vmem>>, vector<16x256xf32>
    tpu.vector_store %arg6[%c0_11, %c0_12], %14 {strides = array<i32>} : memref<16x256xf32, #tpu.memory_space<vmem>>, vector<16x256xf32>,
    return
  }
  func.func @transform_0(%arg0: i32) -> (i32, i32) {
    %c0_i32 = arith.constant 0 : i32
    %c0_i32_0 = arith.constant 0 : i32
    return %arg0, %c0_i32 : i32, i32
  }
  func.func @transform_1(%arg0: i32) -> (i32, i32) {
    %c0_i32 = arith.constant 0 : i32
    %c0_i32_0 = arith.constant 0 : i32
    %c0_i32_1 = arith.constant 0 : i32
    return %c0_i32, %c0_i32_0 : i32, i32
  }
  func.func @transform_2(%arg0: i32) -> (i32, i32) {
    %c0_i32 = arith.constant 0 : i32
    %c0_i32_0 = arith.constant 0 : i32
    %c0_i32_1 = arith.constant 0 : i32
    return %c0_i32, %c0_i32_0 : i32, i32
  }
  func.func @transform_3(%arg0: i32) -> (i32, i32) {
    %c0_i32 = arith.constant 0 : i32
    %c0_i32_0 = arith.constant 0 : i32
    %c0_i32_1 = arith.constant 0 : i32
    return %c0_i32, %c0_i32_0 : i32, i32
  }
  func.func @transform_4(%arg0: i32) -> (i32, i32) {
    %c0_i32 = arith.constant 0 : i32
    %c0_i32_0 = arith.constant 0 : i32
    %c0_i32_1 = arith.constant 0 : i32
    return %c0_i32, %c0_i32_0 : i32, i32
  }
  func.func @transform_5(%arg0: i32) -> (i32, i32) {
    %c0_i32 = arith.constant 0 : i32
    %c0_i32_0 = arith.constant 0 : i32
    return %arg0, %c0_i32 : i32, i32
  }
}

</mosaic_0001>

<bundles_post_ra>
// kernel: tpu_custom_call.1
= control target key start
LH: loop header
LB: loop body
LE: loop exit
PB: predicated region body
PF: predicated region fallthrough
CT: control target
= control target key end

     0   :  { %10 = vsyncpa [#allocation3], 0  ;;  %s1642_s0 = inlined_call_operand.hbm [shape: f32[16,256], index: 0, kind: input, shape index: {}]   ;;  %s1643_s1 = inlined_call_operand.hbm [shape: bf16[256,512], index: 1, kind: input, shape index: {}]   ;;  %s1644_s2 = inlined_call_operand.vmem [shape: f32[1,512], index: 2, kind: input, shape index: {}]   ;;  %s1645_s3 = inlined_call_operand.hbm [shape: bf16[512,256], index: 3, kind: input, shape index: {}]   ;;  %s1646_s4 = inlined_call_operand.vmem [shape: f32[1,256], index: 4, kind: input, shape index: {}]   ;;  %s1647_s5 = inlined_call_operand.hbm [shape: f32[16,256], index: 5, kind: output, shape index: {}]  }
   0x1   :  { %11 = vsyncpa [#allocation6], 0 }
   0x2   :  { %12 = vsyncpa [#allocation4], 0  ;;  %s1506_s18 = smov [#allocation5]   ;;  %s1507_s20 = smov [#allocation2]  }
   0x3   :  { %s30_s19 = sshll.u32 %s1506_s18, 4  ;;  %s18_s21 = sshll.u32 %s1507_s20, 4  ;;  %s31_s19 = int_to_ptr.vmem [resolvable:$true] %s30_s19  ;;  %s1544_s21 = int_to_ptr.vmem [resolvable:$true] %s18_s21 }
   0x4   :  { %s1412_s24 = scalar_lea.hbm %s1643_s1, 8192 }
   0x5   :  { %p1413_p0 = scmp.ne.s32.totalorder %s1643_s1, %s1412_s24  ;;  %p1416_p1 = scmp.lt.u32.totalorder %s1412_s24, %s1643_s1 }
   0x7   :  { %p1418_p2 = pnand %p1416_p1, %p1413_p0 }
   0x9   :  { %1421 = shalt.err (!%p1418_p2)
}
   0xa   :  { %s1422_s29 = scalar_lea.vmem %s31_s19, 8192  ;;  %p1427_p4 = scmp.lt.s32.totalorder %s31_s19, %s31_s19 }
   0xb   :  { %p1423_p3 = scmp.ne.s32.totalorder %s31_s19, %s1422_s29  ;;  %p1428_p5 = scmp.lt.s32.totalorder %s1422_s29, %s1422_s29 }
   0xd   :  { %p1429_p6 = por %p1428_p5, %p1427_p4 }
   0xf   :  { %p1430_p7 = pnand %p1429_p6, %p1423_p3 }
  0x11   :  { %1433 = shalt.err (!%p1430_p7)
}
  0x12   :  { %s1508_s30 = smov 256   ;;  %s1509_s6 = smov 16  }
  0x13   :  { %36 = dma.hbm_to_vmem [thread:$0]  %s1643_s1, 8192, %s31_s19, [#allocation6], %s1508_s30, %s1508_s30, %s1509_s6  }
  0x14   :  { %s1434_s11 = scalar_lea.hbm %s1642_s0, 512 }
  0x15   :  { %p1435_p8 = scmp.ne.s32.totalorder %s1642_s0, %s1434_s11  ;;  %p1438_p9 = scmp.lt.u32.totalorder %s1434_s11, %s1642_s0 }
  0x17   :  { %p1440_p10 = pnand %p1438_p9, %p1435_p8 }
  0x19   :  { %1443 = shalt.err (!%p1440_p10)
}
  0x1a   :  { %s1444_s16 = scalar_lea.vmem %s1544_s21, 512  ;;  %p1449_p12 = scmp.lt.s32.totalorder %s1544_s21, %s1544_s21 }
  0x1b   :  { %p1445_p11 = scmp.ne.s32.totalorder %s1544_s21, %s1444_s16  ;;  %p1450_p13 = scmp.lt.s32.totalorder %s1444_s16, %s1444_s16 }
  0x1d   :  { %p1451_p0 = por %p1450_p13, %p1449_p12 }
  0x1f   :  { %p1452_p1 = pnand %p1451_p0, %p1445_p11 }
  0x21   :  { %1455 = shalt.err (!%p1452_p1)
}
  0x22   :  { %24 = dma.hbm_to_vmem [thread:$0]  %s1642_s0, 512, %s1544_s21, [#allocation3], %s1508_s30, %s1508_s30, %s1509_s6  }
  0x23   :  { %s1510_s18 = smov [#allocation7]   ;;  %s1456_s23 = scalar_lea.hbm %s1645_s3, 8192 }
  0x24   :  { %s44_s19 = sshll.u32 %s1510_s18, 4  ;;  %p1457_p2 = scmp.ne.s32.totalorder %s1645_s3, %s1456_s23  ;;  %s45_s19 = int_to_ptr.vmem [resolvable:$true] %s44_s19 }
  0x25   :  { %p1460_p3 = scmp.lt.u32.totalorder %s1456_s23, %s1645_s3 }
  0x27   :  { %p1462_p4 = pnand %p1460_p3, %p1457_p2 }
  0x29   :  { %1465 = shalt.err (!%p1462_p4)
}
  0x2a   :  { %s1466_s28 = scalar_lea.vmem %s45_s19, 8192  ;;  %p1471_p6 = scmp.lt.s32.totalorder %s45_s19, %s45_s19 }
  0x2b   :  { %p1467_p5 = scmp.ne.s32.totalorder %s45_s19, %s1466_s28  ;;  %p1472_p7 = scmp.lt.s32.totalorder %s1466_s28, %s1466_s28 }
  0x2d   :  { %p1473_p8 = por %p1472_p7, %p1471_p6 }
  0x2f   :  { %p1474_p9 = pnand %p1473_p8, %p1467_p5 }
  0x31   :  { %1477 = shalt.err (!%p1474_p9)
}
  0x32   :  { %s1511_s0 = smov 128   ;;  %s1512_s21 = smov 8  }
  0x33   :  { %50 = dma.hbm_to_vmem [thread:$0]  %s1645_s3, 8192, %s45_s19, [#allocation6], %s1511_s0, %s1511_s0, %s1512_s21  }
  0x34   :  { %1500 = dma.done.wait [#allocation3], 512  }
  0x35   :  { %1501 = vsyncadd [#allocation3], 4294966784 }
  0x36   :  { %1502 = dma.done.wait [#allocation6], 16384  }
  0x37   :  { %1503 = vsyncadd [#allocation6], 4294950912  ;;  %v1220_v0 = vld [vmem:[#allocation5 + $0x4] ss:$16 sps:$4 sm:$0xff]   ;;  %v1222_v1 = vld [vmem:[#allocation5] ss:$16 sps:$4 sm:$0xff]  }
  0x38   :  { %474 = vmatprep.subr.bf16.mxu1 %v1220_v0  ;;  %v1223_v2 = vld [vmem:[#allocation5 + $0x24] ss:$16 sps:$4 sm:$0xff]   ;;  %v1225_v3 = vld [vmem:[#allocation5 + $0x20] ss:$16 sps:$4 sm:$0xff]   ;;  %v63_v13 = vld [vmem:[#allocation2 + $0x8] sm:$0xff]  ;;  %s1513_s10 = smov [#allocation8]  }
  0x39   :  { %475 = vmatpush1.bf16.msra.mxu1 %v1222_v1  ;;  %v1226_v4 = vld [vmem:[#allocation5 + $0x44] ss:$16 sps:$4 sm:$0xff]   ;;  %v1228_v5 = vld [vmem:[#allocation5 + $0x40] ss:$16 sps:$4 sm:$0xff]   ;;  %v65_v14 = vld [vmem:[#allocation2 + $0x18] sm:$0xff]  ;;  %s1063_s11 = sshll.u32 %s1513_s10, 4  ;;  %s1064_s11 = int_to_ptr.vmem [resolvable:$true] %s1063_s11 }
  0x3a   :  { %476 = vmatprep.subr.bf16.mxu1 %v1223_v2  ;;  %v1229_v6 = vld [vmem:[#allocation5 + $0x64] ss:$16 sps:$4 sm:$0xff]   ;;  %v1231_v7 = vld [vmem:[#allocation5 + $0x60] ss:$16 sps:$4 sm:$0xff]   ;;  %v1593_v15 = vpack.c.bf16 %v65_v14, %v63_v13  ;;  %v1270_v46 = vld [vmem:[#allocation5 + $0xc] ss:$16 sps:$4 sm:$0xff]   ;;  %p1483_p11 = scmp.lt.s32.totalorder %s1064_s11, %s1064_s11 }
  0x3b   :  { %v1232_v8 = vld [vmem:[#allocation5 + $0x84] ss:$16 sps:$4 sm:$0xff]   ;;  %v1234_v9 = vld [vmem:[#allocation5 + $0x80] ss:$16 sps:$4 sm:$0xff]   ;;  %v1268_v49 = vld [vmem:[#allocation5 + $0x8] ss:$16 sps:$4 sm:$0xff]  }
  0x3c   :  { %v1235_v10 = vld [vmem:[#allocation5 + $0xa4] ss:$16 sps:$4 sm:$0xff]   ;;  %v1237_v11 = vld [vmem:[#allocation5 + $0xa0] ss:$16 sps:$4 sm:$0xff]   ;;  %506 = vmatprep.mubr.bf16.mxu1 %v1593_v15  ;;  %v1273_v51 = vld [vmem:[#allocation5 + $0x2c] ss:$16 sps:$4 sm:$0xff]  }
  0x3d   :  { %477 = vmatpush1.bf16.msra.mxu1 %v1225_v3  ;;  %v1238_v12 = vld [vmem:[#allocation5 + $0xc4] ss:$16 sps:$4 sm:$0xff]   ;;  %v1240_v16 = vld [vmem:[#allocation5 + $0xc0] ss:$16 sps:$4 sm:$0xff]   ;;  %v1271_v54 = vld [vmem:[#allocation5 + $0x28] ss:$16 sps:$4 sm:$0xff]  }
  0x3e   :  { %478 = vmatprep.subr.bf16.mxu1 %v1226_v4  ;;  %v1241_v17 = vld [vmem:[#allocation5 + $0xe4] ss:$16 sps:$4 sm:$0xff]   ;;  %v1243_v18 = vld [vmem:[#allocation5 + $0xe0] ss:$16 sps:$4 sm:$0xff]   ;;  %v1276_v55 = vld [vmem:[#allocation5 + $0x4c] ss:$16 sps:$4 sm:$0xff]  }
  0x3f   :  { %v1244_v19 = vld [vmem:[#allocation5 + $0x104] ss:$16 sps:$4 sm:$0xff]   ;;  %v1246_v20 = vld [vmem:[#allocation5 + $0x100] ss:$16 sps:$4 sm:$0xff]   ;;  %v1274_v58 = vld [vmem:[#allocation5 + $0x48] ss:$16 sps:$4 sm:$0xff]  }
  0x40   :  { %v1247_v21 = vld [vmem:[#allocation5 + $0x124] ss:$16 sps:$4 sm:$0xff]   ;;  %v1249_v22 = vld [vmem:[#allocation5 + $0x120] ss:$16 sps:$4 sm:$0xff]   ;;  %v1279_v59 = vld [vmem:[#allocation5 + $0x6c] ss:$16 sps:$4 sm:$0xff]  }
  0x41   :  { %479 = vmatpush1.bf16.msra.mxu1 %v1228_v5  ;;  %v1250_v23 = vld [vmem:[#allocation5 + $0x144] ss:$16 sps:$4 sm:$0xff]   ;;  %v1252_v24 = vld [vmem:[#allocation5 + $0x140] ss:$16 sps:$4 sm:$0xff]   ;;  %v1277_v62 = vld [vmem:[#allocation5 + $0x68] ss:$16 sps:$4 sm:$0xff]  }
  0x42   :  { %480 = vmatprep.subr.bf16.mxu1 %v1229_v6  ;;  %v1253_v25 = vld [vmem:[#allocation5 + $0x164] ss:$16 sps:$4 sm:$0xff]   ;;  %v1255_v26 = vld [vmem:[#allocation5 + $0x160] ss:$16 sps:$4 sm:$0xff]   ;;  %v1282_v63 = vld [vmem:[#allocation5 + $0x8c] ss:$16 sps:$4 sm:$0xff]  }
  0x43   :  { %v1256_v27 = vld [vmem:[#allocation5 + $0x184] ss:$16 sps:$4 sm:$0xff]   ;;  %v1318_v29 = vld [vmem:[#allocation7] ss:$8 sps:$4 sm:$0xff]   ;;  %v1321_v33 = vld [vmem:[#allocation7 + $0x10] ss:$8 sps:$4 sm:$0xff]  }
  0x44   :  { %v1316_v28 = vld [vmem:[#allocation7 + $0x4] ss:$8 sps:$4 sm:$0xff]   ;;  %v1258_v30 = vld [vmem:[#allocation5 + $0x180] ss:$16 sps:$4 sm:$0xff]   ;;  %v1319_v31 = vld [vmem:[#allocation7 + $0x14] ss:$8 sps:$4 sm:$0xff]  }
  0x45   :  { %481 = vmatpush1.bf16.msra.mxu1 %v1231_v7  ;;  %968 = vmatprep.subr.bf16.mxu0 %v1316_v28  ;;  %v1259_v32 = vld [vmem:[#allocation5 + $0x1a4] ss:$16 sps:$4 sm:$0xff]   ;;  %v1261_v35 = vld [vmem:[#allocation5 + $0x1a0] ss:$16 sps:$4 sm:$0xff]   ;;  %v1280_v2 = vld [vmem:[#allocation5 + $0x88] ss:$16 sps:$4 sm:$0xff]  }
  0x46   :  { %482 = vmatprep.subr.bf16.mxu1 %v1232_v8  ;;  %969 = vmatpush1.bf16.msra.mxu0 %v1318_v29  ;;  %v1322_v34 = vld [vmem:[#allocation7 + $0x24] ss:$8 sps:$4 sm:$0xff]   ;;  %v1324_v37 = vld [vmem:[#allocation7 + $0x20] ss:$8 sps:$4 sm:$0xff]   ;;  %v1325_v38 = vld [vmem:[#allocation7 + $0x34] ss:$8 sps:$4 sm:$0xff]  }
  0x47   :  { %970 = vmatprep.subr.bf16.mxu0 %v1319_v31  ;;  %v1262_v36 = vld [vmem:[#allocation5 + $0x1c4] ss:$16 sps:$4 sm:$0xff]   ;;  %v1264_v39 = vld [vmem:[#allocation5 + $0x1c0] ss:$16 sps:$4 sm:$0xff]   ;;  %v1285_v3 = vld [vmem:[#allocation5 + $0xac] ss:$16 sps:$4 sm:$0xff]  }
  0x48   :  { %v1265_v40 = vld [vmem:[#allocation5 + $0x1e4] ss:$16 sps:$4 sm:$0xff]   ;;  %v1327_v41 = vld [vmem:[#allocation7 + $0x30] ss:$8 sps:$4 sm:$0xff]   ;;  %v1330_v47 = vld [vmem:[#allocation7 + $0x40] ss:$8 sps:$4 sm:$0xff]  }
  0x49   :  { %483 = vmatpush1.bf16.msra.mxu1 %v1234_v9  ;;  %v1328_v42 = vld [vmem:[#allocation7 + $0x44] ss:$8 sps:$4 sm:$0xff]   ;;  %v1267_v43 = vld [vmem:[#allocation5 + $0x1e0] ss:$16 sps:$4 sm:$0xff]   ;;  %v1331_v48 = vld [vmem:[#allocation7 + $0x54] ss:$8 sps:$4 sm:$0xff]  }
  0x4a   :  { %484 = vmatprep.subr.bf16.mxu1 %v1235_v10  ;;  %971 = vmatpush1.bf16.msra.mxu0 %v1321_v33  ;;  %v62_v44 = vld [vmem:[#allocation2] sm:$0xff]  ;;  %v64_v45 = vld [vmem:[#allocation2 + $0x10] sm:$0xff]  ;;  %v1283_v6 = vld [vmem:[#allocation5 + $0xa8] ss:$16 sps:$4 sm:$0xff]  }
  0x4b   :  { %972 = vmatprep.subr.bf16.mxu0 %v1322_v34  ;;  %v1596_v50 = vpack.c.bf16 %v64_v45, %v62_v44  ;;  %v1333_v52 = vld [vmem:[#allocation7 + $0x50] ss:$8 sps:$4 sm:$0xff]   ;;  %v1334_v53 = vld [vmem:[#allocation7 + $0x64] ss:$8 sps:$4 sm:$0xff]   ;;  %v1336_v56 = vld [vmem:[#allocation7 + $0x60] ss:$8 sps:$4 sm:$0xff]  }
  0x4c   :  { %v1337_v57 = vld [vmem:[#allocation7 + $0x74] ss:$8 sps:$4 sm:$0xff]   ;;  %v1339_v60 = vld [vmem:[#allocation7 + $0x70] ss:$8 sps:$4 sm:$0xff]   ;;  %v1340_v61 = vld [vmem:[#allocation7 + $0x84] ss:$8 sps:$4 sm:$0xff]  }
  0x4d   :  { %485 = vmatpush1.bf16.msra.mxu1 %v1237_v11  ;;  %v1342_v0 = vld [vmem:[#allocation7 + $0x80] ss:$8 sps:$4 sm:$0xff]   ;;  %v1343_v1 = vld [vmem:[#allocation7 + $0x94] ss:$8 sps:$4 sm:$0xff]   ;;  %v1345_v4 = vld [vmem:[#allocation7 + $0x90] ss:$8 sps:$4 sm:$0xff]  }
  0x4e   :  { %486 = vmatprep.subr.bf16.mxu1 %v1238_v12  ;;  %973 = vmatpush1.bf16.msra.mxu0 %v1324_v37  ;;  %v1346_v5 = vld [vmem:[#allocation7 + $0xa4] ss:$8 sps:$4 sm:$0xff]   ;;  %v1348_v8 = vld [vmem:[#allocation7 + $0xa0] ss:$8 sps:$4 sm:$0xff]   ;;  %v1349_v9 = vld [vmem:[#allocation7 + $0xb4] ss:$8 sps:$4 sm:$0xff]  }
  0x4f   :  { %974 = vmatprep.subr.bf16.mxu0 %v1325_v38  ;;  %v1288_v7 = vld [vmem:[#allocation5 + $0xcc] ss:$16 sps:$4 sm:$0xff]   ;;  %v1286_v10 = vld [vmem:[#allocation5 + $0xc8] ss:$16 sps:$4 sm:$0xff]  }
  0x50   :  { %v1291_v11 = vld [vmem:[#allocation5 + $0xec] ss:$16 sps:$4 sm:$0xff]   ;;  %v1351_v12 = vld [vmem:[#allocation7 + $0xb0] ss:$8 sps:$4 sm:$0xff]  }
  0x51   :  { %487 = vmatpush1.bf16.msra.mxu1 %v1240_v16  ;;  %v1352_v13 = vld [vmem:[#allocation7 + $0xc4] ss:$8 sps:$4 sm:$0xff]   ;;  %v1289_v14 = vld [vmem:[#allocation5 + $0xe8] ss:$16 sps:$4 sm:$0xff]  }
  0x52   :  { %488 = vmatprep.subr.bf16.mxu1 %v1241_v17  ;;  %975 = vmatpush1.bf16.msra.mxu0 %v1327_v41  ;;  %v1354_v16 = vld [vmem:[#allocation7 + $0xc0] ss:$8 sps:$4 sm:$0xff]   ;;  %v1355_v17 = vld [vmem:[#allocation7 + $0xd4] ss:$8 sps:$4 sm:$0xff]   ;;  %v1357_v33 = vld [vmem:[#allocation7 + $0xd0] ss:$8 sps:$4 sm:$0xff]  }
  0x53   :  { %976 = vmatprep.subr.bf16.mxu0 %v1328_v42  ;;  %v1307_v28 = vld [vmem:[#allocation5 + $0x1a8] ss:$16 sps:$4 sm:$0xff]   ;;  %v1312_v29 = vld [vmem:[#allocation5 + $0x1cc] ss:$16 sps:$4 sm:$0xff]   ;;  %v1607_v42 = vld [vmem:[%s1644_s2] sm:$0xf] }
  0x54   :  { %v1315_v31 = vld [vmem:[#allocation5 + $0x1ec] ss:$16 sps:$4 sm:$0xff]   ;;  %v1363_v37 = vld [vmem:[#allocation7 + $0xf0] ss:$8 sps:$4 sm:$0xff]  }
  0x55   :  { %489 = vmatpush1.bf16.msra.mxu1 %v1243_v18  ;;  %v1292_v18 = vld [vmem:[#allocation5 + $0x108] ss:$16 sps:$4 sm:$0xff]   ;;  %v1358_v34 = vld [vmem:[#allocation7 + $0xe4] ss:$8 sps:$4 sm:$0xff]  }
  0x56   :  { %490 = vmatprep.subr.bf16.mxu1 %v1244_v19  ;;  %977 = vmatpush1.bf16.msra.mxu0 %v1330_v47  ;;  %v1297_v19 = vld [vmem:[#allocation5 + $0x12c] ss:$16 sps:$4 sm:$0xff]  }
  0x57   :  { %978 = vmatprep.subr.bf16.mxu0 %v1331_v48  ;;  %v1366_v38 = vld [vmem:[#allocation7 + $0x104] ss:$8 sps:$4 sm:$0xff]  }
  0x59   :  { %491 = vmatpush1.bf16.msra.mxu1 %v1246_v20  ;;  %v1295_v20 = vld [vmem:[#allocation5 + $0x128] ss:$16 sps:$4 sm:$0xff]  }
  0x5a   :  { %492 = vmatprep.subr.bf16.mxu1 %v1247_v21  ;;  %979 = vmatpush1.bf16.msra.mxu0 %v1333_v52  ;;  %v1300_v21 = vld [vmem:[#allocation5 + $0x14c] ss:$16 sps:$4 sm:$0xff]  }
  0x5b   :  { %980 = vmatprep.subr.bf16.mxu0 %v1334_v53 }
  0x5d   :  { %493 = vmatpush1.bf16.msra.mxu1 %v1249_v22  ;;  %v1298_v22 = vld [vmem:[#allocation5 + $0x148] ss:$16 sps:$4 sm:$0xff]  }
  0x5e   :  { %494 = vmatprep.subr.bf16.mxu1 %v1250_v23  ;;  %981 = vmatpush1.bf16.msra.mxu0 %v1336_v56  ;;  %v1303_v23 = vld [vmem:[#allocation5 + $0x16c] ss:$16 sps:$4 sm:$0xff]  }
  0x5f   :  { %982 = vmatprep.subr.bf16.mxu0 %v1337_v57 }
  0x61   :  { %495 = vmatpush1.bf16.msra.mxu1 %v1252_v24  ;;  %v1301_v24 = vld [vmem:[#allocation5 + $0x168] ss:$16 sps:$4 sm:$0xff]  }
  0x62   :  { %496 = vmatprep.subr.bf16.mxu1 %v1253_v25  ;;  %983 = vmatpush1.bf16.msra.mxu0 %v1339_v60  ;;  %v1306_v25 = vld [vmem:[#allocation5 + $0x18c] ss:$16 sps:$4 sm:$0xff]   ;;  %v1364_v60 = vld [vmem:[#allocation7 + $0x100] ss:$8 sps:$4 sm:$0xff]  }
  0x63   :  { %984 = vmatprep.subr.bf16.mxu0 %v1340_v61  ;;  %v1369_v61 = vld [vmem:[#allocation7 + $0x114] ss:$8 sps:$4 sm:$0xff]  }
  0x65   :  { %497 = vmatpush1.bf16.msra.mxu1 %v1255_v26  ;;  %v1304_v26 = vld [vmem:[#allocation5 + $0x188] ss:$16 sps:$4 sm:$0xff]  }
  0x66   :  { %498 = vmatprep.subr.bf16.mxu1 %v1256_v27  ;;  %985 = vmatpush1.bf16.msra.mxu0 %v1342_v0  ;;  %v1309_v27 = vld [vmem:[#allocation5 + $0x1ac] ss:$16 sps:$4 sm:$0xff]   ;;  %v1370_v0 = vld [vmem:[#allocation7 + $0x120] ss:$8 sps:$4 sm:$0xff]  }
  0x67   :  { %986 = vmatprep.subr.bf16.mxu0 %v1343_v1  ;;  %v1375_v1 = vld [vmem:[#allocation7 + $0x134] ss:$8 sps:$4 sm:$0xff]  }
  0x69   :  { %499 = vmatpush1.bf16.msra.mxu1 %v1258_v30  ;;  %v1310_v30 = vld [vmem:[#allocation5 + $0x1c8] ss:$16 sps:$4 sm:$0xff]  }
  0x6a   :  { %500 = vmatprep.subr.bf16.mxu1 %v1259_v32  ;;  %987 = vmatpush1.bf16.msra.mxu0 %v1345_v4  ;;  %v1313_v32 = vld [vmem:[#allocation5 + $0x1e8] ss:$16 sps:$4 sm:$0xff]  }
  0x6b   :  { %988 = vmatprep.subr.bf16.mxu0 %v1346_v5  ;;  %v1376_v4 = vld [vmem:[#allocation7 + $0x140] ss:$8 sps:$4 sm:$0xff]   ;;  %v1381_v5 = vld [vmem:[#allocation7 + $0x154] ss:$8 sps:$4 sm:$0xff]  }
  0x6d   :  { %501 = vmatpush1.bf16.msra.mxu1 %v1261_v35  ;;  %v1360_v35 = vld [vmem:[#allocation7 + $0xe0] ss:$8 sps:$4 sm:$0xff]  }
  0x6e   :  { %502 = vmatprep.subr.bf16.mxu1 %v1262_v36  ;;  %989 = vmatpush1.bf16.msra.mxu0 %v1348_v8  ;;  %v1361_v36 = vld [vmem:[#allocation7 + $0xf4] ss:$8 sps:$4 sm:$0xff]   ;;  %v1382_v8 = vld [vmem:[#allocation7 + $0x160] ss:$8 sps:$4 sm:$0xff]  }
  0x6f   :  { %990 = vmatprep.subr.bf16.mxu0 %v1349_v9  ;;  %v1387_v9 = vld [vmem:[#allocation7 + $0x174] ss:$8 sps:$4 sm:$0xff]  }
  0x71   :  { %503 = vmatpush1.bf16.msra.mxu1 %v1264_v39  ;;  %v134_v39 = vlaneseq }
  0x72   :  { %504 = vmatprep.subr.bf16.mxu1 %v1265_v40  ;;  %991 = vmatpush1.bf16.msra.mxu0 %v1351_v12  ;;  %v1388_v12 = vld [vmem:[#allocation7 + $0x180] ss:$8 sps:$4 sm:$0xff]  }
  0x73   :  { %992 = vmatprep.subr.bf16.mxu0 %v1352_v13  ;;  %v1601_v40 = vshrl.u32 %v134_v39, 7  ;;  %v1393_v13 = vld [vmem:[#allocation7 + $0x194] ss:$8 sps:$4 sm:$0xff]  }
  0x75   :  { %505 = vmatpush1.bf16.msra.mxu1 %v1267_v43  ;;  %v136_v41 = vsub.s32 0, %v1601_v40  ;;  %v140_v43 = vsub.s32 1, %v1601_v40 }
  0x76   :  { %517 = vmatprep.subr.bf16.mxu1 %v1270_v46  ;;  %993 = vmatpush1.bf16.msra.mxu0 %v1354_v16  ;;  %v1394_v16 = vld [vmem:[#allocation7 + $0x1a0] ss:$8 sps:$4 sm:$0xff]  }
  0x77   :  { %994 = vmatprep.subr.bf16.mxu0 %v1355_v17  ;;  %v137_v44 = vrot.slane %v1607_v42, %v136_v41  ;;  %v141_v45 = vrot.slane %v1607_v42, %v140_v43  ;;  %v1399_v17 = vld [vmem:[#allocation7 + $0x1b4] ss:$8 sps:$4 sm:$0xff]  }
  0x78   :  { %507 = vmatmul.mubr.bf16.vlgmr.msra.gmra.mrb[0].mxu1 %v1596_v50 }
  0x79   :  { %518 = vmatpush1.bf16.msra.mxu1 %v1268_v49  ;;  %549 = vmatprep.mubr.bf16.mxu1 %v1593_v15  ;;  %v1294_v15 = vld [vmem:[#allocation5 + $0x10c] ss:$16 sps:$4 sm:$0xff]  }
  0x7a   :  { %519 = vmatprep.subr.bf16.mxu1 %v1273_v51  ;;  %995 = vmatpush1.bf16.msra.mxu0 %v1357_v33 }
  0x7b   :  { %996 = vmatprep.subr.bf16.mxu0 %v1358_v34 }
  0x7d   :  { %520 = vmatpush1.bf16.msra.mxu1 %v1271_v54 }
  0x7e   :  { %521 = vmatprep.subr.bf16.mxu1 %v1276_v55  ;;  %997 = vmatpush1.bf16.msra.mxu0 %v1360_v35 }
  0x7f   :  { %998 = vmatprep.subr.bf16.mxu0 %v1361_v36 }
  0x81   :  { %522 = vmatpush1.bf16.msra.mxu1 %v1274_v58 }
  0x82   :  { %523 = vmatprep.subr.bf16.mxu1 %v1279_v59  ;;  %999 = vmatpush1.bf16.msra.mxu0 %v1363_v37 }
  0x83   :  { %1011 = vmatprep.subr.bf16.mxu0 %v1366_v38  ;;  %v1409_v38 = vld [vmem:[#allocation7 + $0x1f0] ss:$8 sps:$4 sm:$0xff]  }
  0x85   :  { %524 = vmatpush1.bf16.msra.mxu1 %v1277_v62  ;;  %v1367_v62 = vld [vmem:[#allocation7 + $0x110] ss:$8 sps:$4 sm:$0xff]  }
  0x86   :  { %525 = vmatprep.subr.bf16.mxu1 %v1282_v63  ;;  %v1372_v63 = vld [vmem:[#allocation7 + $0x124] ss:$8 sps:$4 sm:$0xff]  }
  0x89   :  { %526 = vmatpush1.bf16.msra.mxu1 %v1280_v2  ;;  %v1373_v2 = vld [vmem:[#allocation7 + $0x130] ss:$8 sps:$4 sm:$0xff]  }
  0x8a   :  { %527 = vmatprep.subr.bf16.mxu1 %v1285_v3  ;;  %v1378_v3 = vld [vmem:[#allocation7 + $0x144] ss:$8 sps:$4 sm:$0xff]  }
  0x8d   :  { %528 = vmatpush1.bf16.msra.mxu1 %v1283_v6  ;;  %v1379_v6 = vld [vmem:[#allocation7 + $0x150] ss:$8 sps:$4 sm:$0xff]  }
  0x8e   :  { %529 = vmatprep.subr.bf16.mxu1 %v1288_v7  ;;  %v1384_v7 = vld [vmem:[#allocation7 + $0x164] ss:$8 sps:$4 sm:$0xff]  }
  0x91   :  { %530 = vmatpush1.bf16.msra.mxu1 %v1286_v10  ;;  %v1385_v10 = vld [vmem:[#allocation7 + $0x170] ss:$8 sps:$4 sm:$0xff]  }
  0x92   :  { %531 = vmatprep.subr.bf16.mxu1 %v1291_v11  ;;  %v1390_v11 = vld [vmem:[#allocation7 + $0x184] ss:$8 sps:$4 sm:$0xff]  }
  0x95   :  { %532 = vmatpush1.bf16.msra.mxu1 %v1289_v14  ;;  %v1391_v14 = vld [vmem:[#allocation7 + $0x190] ss:$8 sps:$4 sm:$0xff]  }
  0x96   :  { %533 = vmatprep.subr.bf16.mxu1 %v1294_v15  ;;  %v1396_v15 = vld [vmem:[#allocation7 + $0x1a4] ss:$8 sps:$4 sm:$0xff]  }
  0x99   :  { %534 = vmatpush1.bf16.msra.mxu1 %v1292_v18  ;;  %v1397_v18 = vld [vmem:[#allocation7 + $0x1b0] ss:$8 sps:$4 sm:$0xff]  }
  0x9a   :  { %535 = vmatprep.subr.bf16.mxu1 %v1297_v19  ;;  %v1402_v19 = vld [vmem:[#allocation7 + $0x1c4] ss:$8 sps:$4 sm:$0xff]  }
  0x9d   :  { %536 = vmatpush1.bf16.msra.mxu1 %v1295_v20  ;;  %v1400_v20 = vld [vmem:[#allocation7 + $0x1c0] ss:$8 sps:$4 sm:$0xff]  }
  0x9e   :  { %537 = vmatprep.subr.bf16.mxu1 %v1300_v21  ;;  %v1405_v21 = vld [vmem:[#allocation7 + $0x1d4] ss:$8 sps:$4 sm:$0xff]  }
  0xa1   :  { %538 = vmatpush1.bf16.msra.mxu1 %v1298_v22  ;;  %v144_v22 = vsub.s32 2, %v1601_v40 }
  0xa2   :  { %539 = vmatprep.subr.bf16.mxu1 %v1303_v23  ;;  %v148_v23 = vsub.s32 3, %v1601_v40 }
  0xa5   :  { %540 = vmatpush1.bf16.msra.mxu1 %v1301_v24  ;;  %v1403_v24 = vld [vmem:[#allocation7 + $0x1d0] ss:$8 sps:$4 sm:$0xff]  }
  0xa6   :  { %541 = vmatprep.subr.bf16.mxu1 %v1306_v25  ;;  %v145_v25 = vrot.slane %v1607_v42, %v144_v22 }
  0xa9   :  { %542 = vmatpush1.bf16.msra.mxu1 %v1304_v26  ;;  %v1408_v26 = vld [vmem:[#allocation7 + $0x1e4] ss:$8 sps:$4 sm:$0xff]  }
  0xaa   :  { %543 = vmatprep.subr.bf16.mxu1 %v1309_v27  ;;  %v149_v27 = vrot.slane %v1607_v42, %v148_v23 }
  0xad   :  { %544 = vmatpush1.bf16.msra.mxu1 %v1307_v28 }
  0xae   :  { %545 = vmatprep.subr.bf16.mxu1 %v1312_v29  ;;  %v1406_v29 = vld [vmem:[#allocation7 + $0x1e0] ss:$8 sps:$4 sm:$0xff]  }
  0xb1   :  { %546 = vmatpush1.bf16.msra.mxu1 %v1310_v30 }
  0xb2   :  { %547 = vmatprep.subr.bf16.mxu1 %v1315_v31 }
  0xb5   :  { %548 = vmatpush1.bf16.msra.mxu1 %v1313_v32  ;;  %v1411_v32 = vld [vmem:[#allocation7 + $0x1f4] ss:$8 sps:$4 sm:$0xff]  }
  0xb8   :  { %550 = vmatmul.mubr.bf16.vlgmr.msra.gmra.mrb[4].mxu1 %v1596_v50 }
 0x14b   :  { %v508_v46 = vpop.f32.mrb[0].mxu1 }
 0x14c   :  { %v509_v47 = vadd.f32 %v508_v46, %v137_v44  ;;  %v510_v48 = vpop.f32.mrb[1].mxu1 }
 0x14d   :  { %v511_v49 = vadd.f32 %v510_v48, %v141_v45  ;;  %v512_v50 = vpop.f32.mrb[2].mxu1  ;;  %v636_v48 = vld [vmem:[%s1646_s4] sm:$0x3]  ;;  %s1478_s4 = scalar_lea.vmem %s1064_s11, 512 }
 0x14e   :  { %v560_v51 = vmax.f32 %v509_v47, 0.0  ;;  %v513_v52 = vadd.f32 %v512_v50, %v137_v44  ;;  %v514_v53 = vpop.f32.mrb[3].mxu1  ;;  %v645_v50 = vrot.slane %v636_v48, %v140_v43  ;;  %p1479_p10 = scmp.ne.s32.totalorder %s1064_s11, %s1478_s4  ;;  %p1484_p12 = scmp.lt.s32.totalorder %s1478_s4, %s1478_s4 }
 0x14f   :  { %v515_v54 = vadd.f32 %v514_v53, %v141_v45  ;;  %v561_v56 = vmax.f32 %v511_v49, 0.0  ;;  %v641_v49 = vrot.slane %v636_v48, %v136_v41 }
 0x150   :  { %v564_v55 = vmax.f32 %v513_v52, 0.0  ;;  %p1485_p13 = por %p1484_p12, %p1483_p11 }
 0x151   :  { %v565_v57 = vmax.f32 %v515_v54, 0.0 }
 0x152   :  { %v568_v58 = vpack.c.bf16 %v564_v55, %v560_v51  ;;  %p1486_p0 = pnand %p1485_p13, %p1479_p10 }
 0x153   :  { %v569_v59 = vpack.c.bf16 %v565_v57, %v561_v56 }
 0x155   :  { %1000 = vmatprep.mubr.bf16.mxu0 %v569_v59 }
 0x156   :  { %1001 = vmatmul.mubr.bf16.vlgmr.msra.gmra.mrb[0].mxu0 %v568_v58 }
 0x157   :  { %1012 = vmatpush1.bf16.msra.mxu0 %v1364_v60 }
 0x158   :  { %1013 = vmatprep.subr.bf16.mxu0 %v1369_v61 }
 0x15b   :  { %1014 = vmatpush1.bf16.msra.mxu0 %v1367_v62 }
 0x15c   :  { %1015 = vmatprep.subr.bf16.mxu0 %v1372_v63 }
 0x15f   :  { %1016 = vmatpush1.bf16.msra.mxu0 %v1370_v0 }
 0x160   :  { %1017 = vmatprep.subr.bf16.mxu0 %v1375_v1 }
 0x163   :  { %1018 = vmatpush1.bf16.msra.mxu0 %v1373_v2 }
 0x164   :  { %1019 = vmatprep.subr.bf16.mxu0 %v1378_v3 }
 0x167   :  { %1020 = vmatpush1.bf16.msra.mxu0 %v1376_v4 }
 0x168   :  { %1021 = vmatprep.subr.bf16.mxu0 %v1381_v5 }
 0x16b   :  { %1022 = vmatpush1.bf16.msra.mxu0 %v1379_v6 }
 0x16c   :  { %1023 = vmatprep.subr.bf16.mxu0 %v1384_v7 }
 0x16f   :  { %1024 = vmatpush1.bf16.msra.mxu0 %v1382_v8 }
 0x170   :  { %1025 = vmatprep.subr.bf16.mxu0 %v1387_v9 }
 0x173   :  { %1026 = vmatpush1.bf16.msra.mxu0 %v1385_v10 }
 0x174   :  { %1027 = vmatprep.subr.bf16.mxu0 %v1390_v11 }
 0x177   :  { %1028 = vmatpush1.bf16.msra.mxu0 %v1388_v12 }
 0x178   :  { %1029 = vmatprep.subr.bf16.mxu0 %v1393_v13 }
 0x17b   :  { %1030 = vmatpush1.bf16.msra.mxu0 %v1391_v14 }
 0x17c   :  { %1031 = vmatprep.subr.bf16.mxu0 %v1396_v15 }
 0x17f   :  { %1032 = vmatpush1.bf16.msra.mxu0 %v1394_v16 }
 0x180   :  { %1033 = vmatprep.subr.bf16.mxu0 %v1399_v17 }
 0x183   :  { %1034 = vmatpush1.bf16.msra.mxu0 %v1397_v18 }
 0x184   :  { %1035 = vmatprep.subr.bf16.mxu0 %v1402_v19 }
 0x187   :  { %1036 = vmatpush1.bf16.msra.mxu0 %v1400_v20 }
 0x188   :  { %1037 = vmatprep.subr.bf16.mxu0 %v1405_v21 }
 0x18b   :  { %v551_v28 = vpop.f32.mrb[4].mxu1  ;;  %1038 = vmatpush1.bf16.msra.mxu0 %v1403_v24 }
 0x18c   :  { %v552_v30 = vadd.f32 %v551_v28, %v145_v25  ;;  %v553_v31 = vpop.f32.mrb[5].mxu1  ;;  %1039 = vmatprep.subr.bf16.mxu0 %v1408_v26 }
 0x18d   :  { %v554_v33 = vadd.f32 %v553_v31, %v149_v27  ;;  %v555_v34 = vpop.f32.mrb[6].mxu1 }
 0x18e   :  { %v556_v35 = vadd.f32 %v555_v34, %v145_v25  ;;  %v557_v36 = vpop.f32.mrb[7].mxu1  ;;  %v562_v39 = vmax.f32 %v552_v30, 0.0 }
 0x18f   :  { %v558_v37 = vadd.f32 %v557_v36, %v149_v27  ;;  %1040 = vmatpush1.bf16.msra.mxu0 %v1406_v29  ;;  %v563_v45 = vmax.f32 %v554_v33, 0.0 }
 0x190   :  { %v566_v44 = vmax.f32 %v556_v35, 0.0  ;;  %1041 = vmatprep.subr.bf16.mxu0 %v1411_v32 }
 0x191   :  { %v567_v46 = vmax.f32 %v558_v37, 0.0 }
 0x192   :  { %v570_v42 = vpack.c.bf16 %v566_v44, %v562_v39 }
 0x193   :  { %v571_v47 = vpack.c.bf16 %v567_v46, %v563_v45  ;;  %1042 = vmatpush1.bf16.msra.mxu0 %v1409_v38 }
 0x195   :  { %1043 = vmatprep.mubr.bf16.mxu0 %v571_v47 }
 0x196   :  { %1044 = vmatmul.mubr.bf16.vlgmr.msra.gmra.mrb[0].mxu0 %v570_v42 }
 0x269   :  { %v1045_v51 = vpop.f32.mrb[0].mxu0 }
 0x26a   :  { %v1204_v52 = vadd.f32 %v1045_v51, %v641_v49  ;;  %v1047_v53 = vpop.f32.mrb[1].mxu0 }
 0x26b   :  { %v1205_v54 = vadd.f32 %v1047_v53, %v645_v50  ;;  %v1049_v55 = vpop.f32.mrb[2].mxu0 }
 0x26c   :  { %1054 = vst [vmem:[#allocation8] sm:$0xff] %v1204_v52  ;;  %v1206_v56 = vadd.f32 %v1049_v55, %v641_v49  ;;  %v1051_v57 = vpop.f32.mrb[3].mxu0 }
 0x26d   :  { %1055 = vst [vmem:[#allocation8 + $0x8] sm:$0xff] %v1205_v54  ;;  %v1207_v58 = vadd.f32 %v1051_v57, %v645_v50 }
 0x26e   :  { %1056 = vst [vmem:[#allocation8 + $0x10] sm:$0xff] %v1206_v56 }
 0x26f   :  { %1057 = vst [vmem:[#allocation8 + $0x18] sm:$0xff] %v1207_v58 }
 0x270   :  { %1489 = shalt.err (!%p1486_p0)
}
 0x271   :  { %s1490_s14 = scalar_lea.hbm %s1647_s5, 512 }
 0x272   :  { %p1491_p1 = scmp.ne.s32.totalorder %s1647_s5, %s1490_s14  ;;  %p1494_p2 = scmp.lt.u32.totalorder %s1490_s14, %s1647_s5 }
 0x274   :  { %p1496_p3 = pnand %p1494_p2, %p1491_p1 }
 0x276   :  { %1499 = shalt.err (!%p1496_p3)
}
 0x277   :  { %1069 = dma.vmem_to_hbm [thread:$0]  %s1064_s11, 512, %s1647_s5, [#allocation4], %s1508_s30, %s1508_s30, %s1509_s6  }
 0x278   :  { %1504 = dma.done.wait [#allocation4], 512  }
 0x279   :  { %1505 = vsyncadd [#allocation4], 4294966784 }
 0x27a   :  { %1073 = vsyncpa [#allocation3], 1 }
 0x27b   :  { %1074 = vsyncpa [#allocation6], 1 }
 0x27c   :  { %1075 = vsyncpa [#allocation4], 1 }

</bundles_post_ra>
